<compile_context>
chip_gen: v5e
topology: v5e:2x2
jax: 0.10.0
libtpu: 0.0.40
codegen_flags: <defaults>
</compile_context>

<pallas_src>
import functools

import jax
import jax.numpy as jnp
from jax.experimental import pallas as pl
from jax.experimental.pallas import tpu as pltpu


def _siren_kernel(x_ref, w_ref, b_ref, o_ref, *, siren_factor):
    # x_ref : (tile_n, in_size)    VMEM (streamed per grid step)
    # w_ref : (in_size, out_size)  VMEM (resident across the grid)
    # b_ref : (1, out_size)        VMEM (resident across the grid)
    # o_ref : (tile_n, out_size)   VMEM (streamed per grid step)
    z = jnp.dot(x_ref[...], w_ref[...], preferred_element_type=jnp.float32)
    z = z + b_ref[...].astype(jnp.float32)  # broadcast (1, out) -> (tile_n, out)
    o_ref[...] = jnp.sin(siren_factor * z).astype(o_ref.dtype)


def _round_up(v, m):
    return (v + m - 1) // m * m


def _choose_tile_n(n, in_size, out_size, itemsize, requested):
    """Largest row-tile (multiple of 8) that fits a conservative VMEM budget."""
    tile = max(8, (int(requested) // 8) * 8)
    tile = min(tile, _round_up(n, 8))  # never bigger than the (8-rounded) problem

    # ~40 MiB VMEM budget: safe inside v7x's 64 MiB physical VMEM, generous on
    # v5e/v6e (128 MiB).  Weight+bias counted double-buffered to be
    # conservative; x/out tiles are double-buffered by the Pallas pipeline.
    budget = 40 * 1024 * 1024
    fixed = 2 * (in_size * out_size + out_size) * itemsize
    per_row = 2 * (in_size + out_size) * itemsize
    avail = max(budget - fixed, 8 * per_row)
    tile = min(tile, max(8, (avail // per_row) // 8 * 8))

    # Keep a few grid steps for big problems so the "parallel" axis can
    # load-balance across the 2 TensorCores on v7x.
    while tile >= 512 and pl.cdiv(n, tile) < 4:
        tile //= 2
    return max(8, (tile // 8) * 8)


def siren_layer(x, weight_t, bias, siren_factor=30.0, tile_n=1024):
    """Apply a SIREN layer: sin(siren_factor * (x @ weight_t + bias)).

    x        : (..., in_size)
    weight_t : (in_size, out_size)  -- transpose of the torch Linear weight
    bias     : (out_size,)
    """
    orig_shape = x.shape
    in_size = orig_shape[-1]
    assert weight_t.shape[0] == in_size
    out_size = weight_t.shape[1]

    x2d = x.reshape(-1, in_size)
    n = x2d.shape[0]
    itemsize = x.dtype.itemsize

    tile_n = _choose_tile_n(n, in_size, out_size, itemsize, tile_n)
    grid = (pl.cdiv(n, tile_n),)  # no padding: Pallas masks the partial tail block

    bias2d = bias.reshape(1, out_size)
    kernel = functools.partial(_siren_kernel, siren_factor=float(siren_factor))

    # Advisory cost estimate so XLA schedules neighbors around the call well.
    w_itemsize = weight_t.dtype.itemsize
    cost = pl.CostEstimate(
        flops=2 * n * in_size * out_size,
        transcendentals=n * out_size,
        bytes_accessed=(n * (in_size + out_size)) * itemsize
        + (in_size * out_size + out_size) * w_itemsize,
    )

    # Raise the scoped-VMEM limit (v5e default is 16 MiB) but stay well under
    # the smallest physical VMEM across generations (64 MiB on v7x).
    est_vmem = (
        2 * tile_n * (in_size + out_size) * itemsize
        + 2 * (in_size * out_size + out_size) * w_itemsize
    )
    vmem_limit = int(min(max(est_vmem + (8 << 20), 32 << 20), 48 << 20))

    out = pl.pallas_call(
        kernel,
        out_shape=jax.ShapeDtypeStruct((n, out_size), x.dtype),
        grid_spec=pltpu.PrefetchScalarGridSpec(
            num_scalar_prefetch=0,
            grid=grid,
            in_specs=[
                pl.BlockSpec((tile_n, in_size), lambda i: (i, 0)),
                pl.BlockSpec((in_size, out_size), lambda i: (0, 0)),
                pl.BlockSpec((1, out_size), lambda i: (0, 0)),
            ],
            out_specs=pl.BlockSpec((tile_n, out_size), lambda i: (i, 0)),
        ),
        compiler_params=pltpu.CompilerParams(
            dimension_semantics=("parallel",),
            vmem_limit_bytes=vmem_limit,
        ),
        cost_estimate=cost,
    )(x2d, weight_t, bias2d)

    return out.reshape(*orig_shape[:-1], out_size)


def init_siren_params(key, in_size, out_size):
    """Deterministic init mimicking torch.nn.Linear default (uniform +-1/sqrt(in))."""
    kw, kb = jax.random.split(key)
    bound = 1.0 / (in_size ** 0.5)
    # Stored already transposed: (in_size, out_size).
    weight_t = jax.random.uniform(
        kw, (in_size, out_size), jnp.float32, minval=-bound, maxval=bound
    )
    bias = jax.random.uniform(
        kb, (out_size,), jnp.float32, minval=-bound, maxval=bound
    )
    return weight_t, bias


if __name__ == "__main__":
    key = jax.random.PRNGKey(0)
    k_x, k_p, k_x2, k_p2 = jax.random.split(key, 4)
    siren_factor = 30.0

    # --- Test 1: small (batch, seq, feature) shape, single grid step. ---
    batch, seq, in_size, out_size = 2, 8, 32, 32
    x = jax.random.normal(k_x, (batch, seq, in_size), jnp.float32)
    weight_t, bias = init_siren_params(k_p, in_size, out_size)

    y = jax.block_until_ready(siren_layer(x, weight_t, bias, siren_factor))
    y_ref = jnp.sin(siren_factor * (x @ weight_t + bias))
    assert y.shape == (batch, seq, out_size)
    assert jnp.allclose(y, y_ref, atol=2e-4, rtol=2e-4), float(
        jnp.max(jnp.abs(y - y_ref))
    )

    # --- Test 2: multi-step grid with a non-divisible tail (no-pad path). ---
    n2, in2, out2 = 200, 64, 48
    x2 = jax.random.normal(k_x2, (n2, in2), jnp.float32)
    w2, b2 = init_siren_params(k_p2, in2, out2)

    y2 = jax.block_until_ready(siren_layer(x2, w2, b2, siren_factor, tile_n=64))
    y2_ref = jnp.sin(siren_factor * (x2 @ w2 + b2))
    assert y2.shape == (n2, out2)
    assert jnp.allclose(y2, y2_ref, atol=2e-4, rtol=2e-4), float(
        jnp.max(jnp.abs(y2 - y2_ref))
    )

    print("KERNEL_OK")
</pallas_src>

<mosaic_0001>
module attributes {stable_mosaic.version = 11 : i64} {
  func.func @_siren_kernel(%arg0: i32, %arg1: memref<16x32xf32, #tpu.memory_space<vmem>>, %arg2: memref<32x32xf32, #tpu.memory_space<vmem>>, %arg3: memref<1x32xf32, #tpu.memory_space<vmem>>, %arg4: memref<16x32xf32, #tpu.memory_space<vmem>>) attributes {dimension_semantics = [#tpu.dimension_semantics<parallel>], iteration_bounds = array<i64: 1>, scalar_prefetch = 0 : i64, scratch_operands = 0 : i64, tpu.core_type = #tpu.core_type<tc>, window_params = [{transform_indices = @transform_0, window_bounds = array<i64: 16, 32>}, {pipeline_mode = #tpu.pipeline_mode<synchronous>, transform_indices = @transform_1, window_bounds = array<i64: 32, 32>}, {pipeline_mode = #tpu.pipeline_mode<synchronous>, transform_indices = @transform_2, window_bounds = array<i64: 1, 32>}, {transform_indices = @transform_3, window_bounds = array<i64: 16, 32>}]} {
    %c0 = arith.constant 0 : index
    %c0_0 = arith.constant 0 : index
    %0 = vector.load %arg1[%c0, %c0_0] : memref<16x32xf32, #tpu.memory_space<vmem>>, vector<16x32xf32>
    %c0_1 = arith.constant 0 : index
    %c0_2 = arith.constant 0 : index
    %1 = vector.load %arg2[%c0_1, %c0_2] : memref<32x32xf32, #tpu.memory_space<vmem>>, vector<32x32xf32>
    %cst = arith.constant dense<0.000000e+00> : vector<16x32xf32>
    %2 = tpu.matmul %0, %1, %cst {dimension_numbers = #tpu.dot_dimension_numbers<[1], [0], [0], [1], [0, 0, 1, 1], [], []>} : vector<16x32xf32>, vector<32x32xf32>, vector<16x32xf32> -> vector<16x32xf32>
    %c0_3 = arith.constant 0 : index
    %c0_4 = arith.constant 0 : index
    %3 = vector.load %arg3[%c0_3, %c0_4] : memref<1x32xf32, #tpu.memory_space<vmem>>, vector<1x32xf32>
    %4 = vector.broadcast %3 : vector<1x32xf32> to vector<16x32xf32>
    %5 = arith.addf %2, %4 : vector<16x32xf32>
    %cst_5 = arith.constant 3.000000e+01 : f32
    %6 = vector.broadcast %cst_5 : f32 to vector<16x32xf32>
    %7 = arith.mulf %6, %5 : vector<16x32xf32>
    %8 = math.sin %7 : vector<16x32xf32>
    %c0_6 = arith.constant 0 : index
    %c0_7 = arith.constant 0 : index
    %9 = vector.load %arg4[%c0_6, %c0_7] : memref<16x32xf32, #tpu.memory_space<vmem>>, vector<16x32xf32>
    tpu.vector_store %arg4[%c0_6, %c0_7], %8 {strides = array<i32>} : memref<16x32xf32, #tpu.memory_space<vmem>>, vector<16x32xf32>,
    return
  }
  func.func @transform_0(%arg0: i32) -> (i32, i32) {
    %c0_i32 = arith.constant 0 : i32
    %c0_i32_0 = arith.constant 0 : i32
    return %arg0, %c0_i32 : i32, i32
  }
  func.func @transform_1(%arg0: i32) -> (i32, i32) {
    %c0_i32 = arith.constant 0 : i32
    %c0_i32_0 = arith.constant 0 : i32
    %c0_i32_1 = arith.constant 0 : i32
    return %c0_i32, %c0_i32_0 : i32, i32
  }
  func.func @transform_2(%arg0: i32) -> (i32, i32) {
    %c0_i32 = arith.constant 0 : i32
    %c0_i32_0 = arith.constant 0 : i32
    %c0_i32_1 = arith.constant 0 : i32
    return %c0_i32, %c0_i32_0 : i32, i32
  }
  func.func @transform_3(%arg0: i32) -> (i32, i32) {
    %c0_i32 = arith.constant 0 : i32
    %c0_i32_0 = arith.constant 0 : i32
    return %arg0, %c0_i32 : i32, i32
  }
}

</mosaic_0001>

<bundles_post_ra>
// kernel: tpu_custom_call.1
= control target key start
LH: loop header
LB: loop body
LE: loop exit
PB: predicated region body
PF: predicated region fallthrough
CT: control target
= control target key end

     0   :  { %8 = vsyncpa [#allocation3], 0  ;;  %s758_s0 = inlined_call_operand.hbm [shape: f32[16,32], index: 0, kind: input, shape index: {}]   ;;  %s759_s1 = inlined_call_operand.hbm [shape: f32[32,32], index: 1, kind: input, shape index: {}]   ;;  %s760_s2 = inlined_call_operand.vmem [shape: f32[1,32], index: 2, kind: input, shape index: {}]   ;;  %s761_s3 = inlined_call_operand.hbm [shape: f32[16,32], index: 3, kind: output, shape index: {}]  }
   0x1   :  { %9 = vsyncpa [#allocation6], 0 }
   0x2   :  { %10 = vsyncpa [#allocation4], 0  ;;  %s15_s14 = sshll.u32 %s758_s0, 4  ;;  %s524_s15 = smov [#allocation2]   ;;  %s16_s14 = int_to_ptr.hbm [resolvable:$true] %s15_s14 }
   0x3   :  { %s17_s16 = sshll.u32 %s524_s15, 4  ;;  %s28_s19 = sshll.u32 %s759_s1, 4  ;;  %s18_s16 = int_to_ptr.vmem [resolvable:$true] %s17_s16  ;;  %s29_s19 = int_to_ptr.hbm [resolvable:$true] %s28_s19 }
   0x4   :  { %s525_s20 = smov 128   ;;  %s526_s21 = smov 8  }
   0x5   :  { %23 = dma.hbm_to_vmem [thread:$0]  %s16_s14, 256, %s18_s16, [#allocation3], %s525_s20, %s525_s20, %s526_s21  }
   0x6   :  { %s527_s22 = smov [#allocation5]  }
   0x7   :  { %s30_s23 = sshll.u32 %s527_s22, 4  ;;  %s31_s23 = int_to_ptr.vmem [resolvable:$true] %s30_s23 }
   0x8   :  { %36 = dma.hbm_to_vmem [thread:$0]  %s29_s19, 512, %s31_s23, [#allocation6], %s525_s20, %s525_s20, %s526_s21  }
   0x9   :  { %518 = dma.done.wait [#allocation3], 256  }
   0xa   :  { %519 = vsyncadd [#allocation3], 4294967040 }
   0xb   :  { %520 = dma.done.wait [#allocation6], 512  }
   0xc   :  { %521 = vsyncadd [#allocation6], 4294966784  ;;  %v52_v0 = vld [vmem:[#allocation5 + $0x18] sm:$0xff]  ;;  %v51_v1 = vld [vmem:[#allocation5 + $0x10] sm:$0xff]  ;;  %vm57_vm0 = vcmask 261120   ;;  %s407_s27 = sshll.u32 %s761_s3, 4  ;;  %s408_s27 = int_to_ptr.hbm [resolvable:$true] %s407_s27 }
   0xd   :  { %76 = vmatpush.msra.mxu0 %v52_v0  ;;  %429 = vmatpush.msra.mxu1 %v52_v0  ;;  %v50_v2 = vld [vmem:[#allocation5 + $0x8] sm:$0xff]  ;;  %v49_v3 = vld [vmem:[#allocation5] sm:$0xff]  ;;  %v47_v4 = vld [vmem:[#allocation2] sm:$0xff]  ;;  %v528_v36 = vmov 683565275  }
   0xe   :  { %v48_v5 = vld [vmem:[#allocation2 + $0x8] sm:$0xff]  ;;  %v445_v6 = vld [vmem:[%s760_s2] ss:$0 sm:$0xff]  ;;  %v529_v38 = vmov 2475754826   ;;  %s535_s2 = smov [#allocation7]  }
   0xf   :  { %77 = vmatpush.msra.mxu0 %v51_v1  ;;  %430 = vmatpush.msra.mxu1 %v51_v1  ;;  %v530_v42 = vmov 2131351028   ;;  %v531_v45 = vmov 2102212464   ;;  %v532_v48 = vmov 920167782  }
  0x10   :  { %v533_v51 = vmov 1326507024   ;;  %s405_s24 = sshll.u32 %s535_s2, 4  ;;  %s406_s24 = int_to_ptr.vmem [resolvable:$true] %s405_s24 }
  0x11   :  { %78 = vmatpush.msra.mxu0 %v50_v2  ;;  %431 = vmatpush.msra.mxu1 %v50_v2 }
  0x13   :  { %79 = vmatpush.msra.mxu0 %v49_v3  ;;  %432 = vmatpush.msra.mxu1 %v49_v3 }
  0x14   :  { %421 = vmatmul.msk.f32.vlgmr.msra.gmra.mxu0 %vm57_vm0, %v47_v4  ;;  %422 = vmatmul.msk.f32.vlgmr.msra.gmra.mxu1 %vm57_vm0, %v48_v5 }
  0x91   :  { %v81_v7 = vpop.f32.mrf.mxu0  ;;  %v84_v8 = vpop.f32.mrf.mxu1 }
  0x92   :  { %v82_v9 = vadd.f32 %v445_v6, %v81_v7  ;;  %v85_v10 = vadd.f32 %v445_v6, %v84_v8 }
  0x94   :  { %v573_v11 = vmul.f32 30.0, %v82_v9  ;;  %v575_v12 = vmul.f32 30.0, %v85_v10 }
  0x96   :  { %v89_v13 = vand.u32 2147483647, %v573_v11  ;;  %v92_v14 = vand.u32 2139095040, %v573_v11  ;;  %v244_v15 = vand.u32 2147483647, %v575_v12  ;;  %v247_v16 = vand.u32 2139095040, %v575_v12 }
  0x98   :  { %v93_v17 = vshrl.u32 %v92_v14, 23  ;;  %v96_v18 = vand.u32 8388607, %v89_v13  ;;  %v248_v19 = vshrl.u32 %v247_v16, 23  ;;  %v251_v22 = vand.u32 8388607, %v244_v15 }
  0x9a   :  { %v423_v20 = vadd.s32 4294967169, %v93_v17  ;;  %v97_v21 = vor.u32 8388608, %v96_v18  ;;  %v426_v23 = vadd.s32 4294967169, %v248_v19  ;;  %v252_v27 = vor.u32 8388608, %v251_v22 }
  0x9c   :  { %v99_v24 = vadd.s32 1, %v423_v20  ;;  %v254_v25 = vadd.s32 1, %v426_v23  ;;  %v585_v26 = vshll.u32 %v97_v21, 8  ;;  %v592_v34 = vshll.u32 %v252_v27, 8 }
  0x9e   :  { %vm100_vm1 = vcmp.gt.s32.totalorder %v99_v24, 0  ;;  %vm255_vm2 = vcmp.gt.s32.totalorder %v254_v25, 0  ;;  %v588_v32 = vand.u32 65535, %v585_v26  ;;  %v139_v40 = vshrl.u32 %v585_v26, 16 }
  0x9f   :  { %v101_v28 = vsel %vm100_vm1, %v99_v24, 0  ;;  %v256_v30 = vsel %vm255_vm2, %v254_v25, 0 }
  0xa0   :  { %v103_v29 = vand.u32 31, %v101_v28  ;;  %v590_v33 = vand.u32 31, %v256_v30  ;;  %v594_v35 = vshrl.u32 %v101_v28, 5  ;;  %v632_v19 = vshrl.u32 %v256_v30, 5 }
  0xa2   :  { %v104_v31 = vsub.s32 32, %v103_v29  ;;  %v106_v37 = vshll.u32 %v528_v36, %v103_v29  ;;  %v109_v39 = vshll.u32 %v529_v38, %v103_v29  ;;  %v112_v44 = vshll.u32 %v530_v42, %v103_v29 }
  0xa3   :  { %v115_v47 = vshll.u32 %v531_v45, %v103_v29  ;;  %v118_v50 = vshll.u32 %v532_v48, %v103_v29  ;;  %v604_v56 = vsub.s32 32, %v590_v33  ;;  %vm121_vm3 = vcmp.lt.s32.totalorder %v594_v35, 1 }
  0xa4   :  { %v107_v41 = vshrl.u32 %v529_v38, %v104_v31  ;;  %v110_v43 = vshrl.u32 %v530_v42, %v104_v31  ;;  %v113_v46 = vshrl.u32 %v531_v45, %v104_v31  ;;  %v116_v49 = vshrl.u32 %v532_v48, %v104_v31 }
  0xa5   :  { %v119_v52 = vshrl.u32 %v533_v51, %v104_v31  ;;  %vm122_vm4 = vcmp.lt.s32.totalorder %v594_v35, 2  ;;  %v105_v59 = vshrl.u32 %v528_v36, %v104_v31  ;;  %vm124_vm5 = vcmp.lt.s32.totalorder %v594_v35, 4 }
  0xa6   :  { %v108_v53 = vor.u32 %v107_v41, %v106_v37  ;;  %v111_v54 = vor.u32 %v110_v43, %v109_v39  ;;  %v114_v55 = vor.u32 %v113_v46, %v112_v44  ;;  %v117_v57 = vor.u32 %v116_v49, %v115_v47 }
  0xa7   :  { %v120_v58 = vor.u32 %v119_v52, %v118_v50  ;;  %vm123_vm6 = vcmp.lt.s32.totalorder %v594_v35, 3  ;;  %v261_v0 = vshll.u32 %v528_v36, %v590_v33  ;;  %v262_v4 = vshrl.u32 %v529_v38, %v604_v56 }
  0xa8   :  { %v129_v60 = vsel %vm121_vm3, %v108_v53, %v111_v54  ;;  %v133_v61 = vsel %vm121_vm3, %v111_v54, %v114_v55  ;;  %v130_v62 = vsel %vm124_vm5, %v117_v57, 920167782  ;;  %v126_v1 = vsel %vm124_vm5, %v114_v55, 2102212464 }
  0xa9   :  { %v134_v63 = vsel %vm124_vm5, %v120_v58, 1326507024  ;;  %v131_v2 = vsel %vm123_vm6, %v114_v55, %v130_v62  ;;  %v264_v7 = vshll.u32 %v529_v38, %v590_v33  ;;  %v265_v8 = vshrl.u32 %v530_v42, %v604_v56 }
  0xaa   :  { %v135_v3 = vsel %vm123_vm6, %v117_v57, %v134_v63  ;;  %v132_v5 = vsel %vm122_vm4, %v129_v60, %v131_v2  ;;  %v125_v17 = vsel %vm121_vm3, %v105_v59, %v108_v53  ;;  %v127_v18 = vsel %vm123_vm6, %v111_v54, %v126_v1 }
  0xab   :  { %v136_v6 = vsel %vm122_vm4, %v133_v61, %v135_v3  ;;  %v162_v14 = vand.u32 65535, %v132_v5  ;;  %v163_v16 = vshrl.u32 %v132_v5, 16  ;;  %v634_v20 = vor.u32 %v262_v4, %v261_v0 }
  0xac   :  { %v140_v9 = vand.u32 65535, %v136_v6  ;;  %v141_v10 = vshrl.u32 %v136_v6, 16  ;;  %v637_v23 = vor.u32 %v265_v8, %v264_v7  ;;  %v268_v24 = vshrl.u32 %v531_v45, %v604_v56 }
  0xad   :  { %v165_v27 = vmul.u32 %v163_v16, %v588_v32  ;;  %v166_v28 = vmul.u32 %v162_v14, %v139_v40  ;;  %v267_v29 = vshll.u32 %v530_v42, %v590_v33  ;;  %v164_v37 = vmul.u32 %v162_v14, %v588_v32 }
  0xae   :  { %v143_v21 = vmul.u32 %v141_v10, %v588_v32  ;;  %v144_v22 = vmul.u32 %v140_v9, %v139_v40  ;;  %v142_v25 = vmul.u32 %v140_v9, %v588_v32  ;;  %v145_v31 = vmul.u32 %v141_v10, %v139_v40 }
  0xaf   :  { %v167_v38 = vmul.u32 %v163_v16, %v139_v40  ;;  %v168_v44 = vshll.u32 %v165_v27, 16  ;;  %v170_v47 = vshll.u32 %v166_v28, 16  ;;  %v269_v49 = vor.u32 %v268_v24, %v267_v29 }
  0xb0   :  { %v146_v30 = vshll.u32 %v143_v21, 16  ;;  %v147_v39 = vshrl.u32 %v143_v21, 16  ;;  %v148_v41 = vshll.u32 %v144_v22, 16  ;;  %v149_v43 = vshrl.u32 %v144_v22, 16 }
  0xb1   :  { %v534_v50 = vmov 0   ;;  %vm172_vm8 = vc.u32 %v164_v37, %v168_v44  ;;  %v174_v53 = vadd.s32 %v168_v44, %v164_v37  ;;  %v271_v42 = vshrl.u32 %v532_v48, %v604_v56 }
  0xb2   :  { %vm150_vm7 = vc.u32 %v142_v25, %v146_v30  ;;  %v152_v46 = vadd.s32 %v146_v30, %v142_v25  ;;  %v173_v32 = vsel %vm172_vm8, 1, %v534_v50  ;;  %v270_v40 = vshll.u32 %v531_v45, %v590_v33 }
  0xb3   :  { %v151_v52 = vsel %vm150_vm7, 1, %v534_v50  ;;  %v175_v57 = vadd.s32 %v173_v32, %v167_v38  ;;  %vm176_vm10 = vc.u32 %v174_v53, %v170_v47  ;;  %v273_v58 = vshll.u32 %v532_v48, %v590_v33 }
  0xb4   :  { %v153_v54 = vadd.s32 %v151_v52, %v145_v31  ;;  %vm154_vm9 = vc.u32 %v152_v46, %v148_v41  ;;  %v177_v60 = vsel %vm176_vm10, 1, %v534_v50  ;;  %v272_v61 = vor.u32 %v271_v42, %v270_v40 }
  0xb5   :  { %v155_v55 = vsel %vm154_vm9, 1, %v534_v50  ;;  %v274_v62 = vshrl.u32 %v533_v51, %v604_v56  ;;  %v169_v63 = vshrl.u32 %v165_v27, 16  ;;  %v171_v0 = vshrl.u32 %v166_v28, 16 }
  0xb6   :  { %v157_v59 = vadd.s32 %v155_v55, %v153_v54  ;;  %v657_v1 = vadd.s32 %v174_v53, %v170_v47  ;;  %v179_v2 = vadd.s32 %v177_v60, %v175_v57  ;;  %vm276_vm11 = vcmp.lt.s32.totalorder %v632_v19, 1 }
  0xb7   :  { %v275_v3 = vor.u32 %v274_v62, %v273_v58  ;;  %vm279_vm12 = vcmp.lt.s32.totalorder %v632_v19, 4  ;;  %vm278_vm13 = vcmp.lt.s32.totalorder %v632_v19, 3  ;;  %v284_v33 = vsel %vm276_vm11, %v634_v20, %v637_v23 }
  0xb8   :  { %v158_v45 = vadd.s32 %v157_v59, %v147_v39  ;;  %v180_v4 = vadd.s32 %v179_v2, %v169_v63  ;;  %v285_v48 = vsel %vm279_vm12, %v272_v61, 920167782  ;;  %vm277_vm14 = vcmp.lt.s32.totalorder %v632_v19, 2 }
  0xb9   :  { %v286_v5 = vsel %vm278_vm13, %v269_v49, %v285_v48  ;;  %v288_v6 = vsel %vm276_vm11, %v637_v23, %v269_v49  ;;  %v128_v7 = vsel %vm122_vm4, %v125_v17, %v127_v18  ;;  %v289_v10 = vsel %vm279_vm12, %v275_v3, 1326507024 }
  0xba   :  { %v668_v51 = vadd.s32 %v158_v45, %v149_v43  ;;  %v181_v8 = vadd.s32 %v180_v4, %v171_v0  ;;  %v287_v9 = vsel %vm277_vm14, %v284_v33, %v286_v5  ;;  %v290_v14 = vsel %vm278_vm13, %v272_v61, %v289_v10 }
  0xbb   :  { %v293_v16 = vand.u32 65535, %v592_v34  ;;  %v317_v21 = vand.u32 65535, %v287_v9  ;;  %v291_v35 = vsel %vm277_vm14, %v288_v6, %v290_v14  ;;  %v294_v17 = vshrl.u32 %v592_v34, 16 }
  0xbc   :  { %vm184_vm15 = vc.u32 %v668_v51, %v657_v1  ;;  %v185_v22 = vadd.s32 1, %v181_v8  ;;  %v318_v18 = vshrl.u32 %v287_v9, 16  ;;  %v182_v24 = vmul.u32 %v585_v26, %v128_v7 }
  0xbd   :  { %v295_v25 = vand.u32 65535, %v291_v35  ;;  %v296_v27 = vshrl.u32 %v291_v35, 16  ;;  %v321_v31 = vmul.u32 %v317_v21, %v294_v17  ;;  %v260_v37 = vshrl.u32 %v528_v36, %v604_v56 }
  0xbe   :  { %v186_v28 = vsel %vm184_vm15, %v185_v22, %v181_v8  ;;  %v320_v29 = vmul.u32 %v318_v18, %v293_v16  ;;  %v281_v41 = vsel %vm279_vm12, %v269_v49, 2102212464  ;;  %v319_v43 = vmul.u32 %v317_v21, %v293_v16 }
  0xbf   :  { %v187_v30 = vadd.s32 %v186_v28, %v182_v24  ;;  %v298_v38 = vmul.u32 %v296_v27, %v293_v16  ;;  %v299_v39 = vmul.u32 %v295_v25, %v294_v17  ;;  %v322_v44 = vmul.u32 %v318_v18, %v294_v17 }
  0xc0   :  { %v323_v46 = vshll.u32 %v320_v29, 16  ;;  %v297_v52 = vmul.u32 %v295_v25, %v293_v16  ;;  %v300_v26 = vmul.u32 %v296_v27, %v294_v17  ;;  %v325_v54 = vshll.u32 %v321_v31, 16 }
  0xc1   :  { %v188_v47 = vadd.s32 536870912, %v187_v30  ;;  %v301_v53 = vshll.u32 %v298_v38, 16  ;;  %v303_v42 = vshll.u32 %v299_v39, 16  ;;  %v280_v58 = vsel %vm276_vm11, %v260_v37, %v634_v20 }
  0xc2   :  { %vm327_vm1 = vc.u32 %v319_v43, %v323_v46  ;;  %v329_v32 = vadd.s32 %v323_v46, %v319_v43  ;;  %v282_v60 = vsel %vm278_vm13, %v637_v23, %v281_v41  ;;  %v324_v62 = vshrl.u32 %v320_v29, 16 }
  0xc3   :  { %v695_v40 = vshrl.u32 %v188_v47, 30  ;;  %vm305_vm2 = vc.u32 %v297_v52, %v301_v53  ;;  %v307_v36 = vadd.s32 %v301_v53, %v297_v52  ;;  %v328_v56 = vsel %vm327_vm1, 1, %v534_v50 }
  0xc4   :  { %v306_v55 = vsel %vm305_vm2, 1, %v534_v50  ;;  %v330_v49 = vadd.s32 %v328_v56, %v322_v44  ;;  %vm331_vm3 = vc.u32 %v329_v32, %v325_v54  ;;  %v302_v2 = vshrl.u32 %v298_v38, 16 }
  0xc5   :  { %v190_v57 = vshll.u32 %v695_v40, 30  ;;  %v308_v59 = vadd.s32 %v306_v55, %v300_v26  ;;  %vm309_vm4 = vc.u32 %v307_v36, %v303_v42  ;;  %v332_v63 = vsel %vm331_vm3, 1, %v534_v50 }
  0xc6   :  { %v310_v61 = vsel %vm309_vm4, 1, %v534_v50  ;;  %v334_v3 = vadd.s32 %v332_v63, %v330_v49  ;;  %v304_v4 = vshrl.u32 %v299_v39, 16  ;;  %v326_v33 = vshrl.u32 %v321_v31, 16 }
  0xc7   :  { %v191_v0 = vsub.s32 %v187_v30, %v190_v57  ;;  %v312_v45 = vadd.s32 %v310_v61, %v308_v59  ;;  %v283_v6 = vsel %vm277_vm14, %v280_v58, %v282_v60  ;;  %v333_v8 = vadd.s32 %v329_v32, %v325_v54 }
  0xc8   :  { %v335_v5 = vadd.s32 %v334_v3, %v324_v62  ;;  %v337_v16 = vmul.u32 %v592_v34, %v283_v6  ;;  %v183_v17 = vadd.s32 %v657_v1, %v668_v51  ;;  %vm91_vm9 = vcmp.lt.s32.totalorder %v573_v11, 0 }
  0xc9   :  { %vm192_vm5 = vcmp.lt.s32.totalorder %v191_v0, 0  ;;  %v193_v48 = vsub.s32 0, %v191_v0  ;;  %v313_v20 = vadd.s32 %v312_v45, %v302_v2  ;;  %vm719_vm10 = vcmp.le.f32.partialorder %v89_v13, 0.7853982 }
  0xca   :  { %v336_v9 = vadd.s32 %v335_v5, %v326_v33  ;;  %v213_v53 = vsub.s32 4, %v695_v40  ;;  %vm246_vm12 = vcmp.lt.s32.totalorder %v575_v12, 0  ;;  %vm733_vm13 = vcmp.le.f32.partialorder %v244_v15, 0.7853982 }
  0xcb   :  { %v194_v7 = vsel %vm192_vm5, %v193_v48, %v191_v0  ;;  %v314_v23 = vadd.s32 %v313_v20, %v304_v4  ;;  %vm232_vm2 = vweird.f32 %v573_v11 }
  0xcc   :  { %v195_v10 = vclz %v194_v7  ;;  %v340_v50 = vadd.s32 1, %v336_v9  ;;  %v214_v13 = vsel %vm91_vm9, %v213_v53, %v695_v40 }
  0xcd   :  { %vm339_vm6 = vc.u32 %v314_v23, %v333_v8  ;;  %v338_v36 = vadd.s32 %v333_v8, %v314_v23  ;;  %v216_v45 = vsel %vm719_vm10, 0, %v214_v13 }
  0xce   :  { %v424_v14 = vadd.s32 4294967294, %v195_v10  ;;  %v341_v21 = vsel %vm339_vm6, %v340_v50, %v336_v9  ;;  %v233_v6 = vadd.s32 3, %v216_v45  ;;  %vm387_vm6 = vweird.f32 %v575_v12 }
  0xcf   :  { %v342_v22 = vadd.s32 %v341_v21, %v337_v16 }
  0xd0   :  { %vm425_vm7 = vcmp.lt.s32.totalorder %v424_v14, 0  ;;  %v234_v50 = vand.u32 3, %v233_v6 }
  0xd1   :  { %v198_v35 = vsel %vm425_vm7, 0, %v424_v14  ;;  %v343_v24 = vadd.s32 536870912, %v342_v22 }
  0xd2   :  { %v199_v18 = vsub.s32 32, %v198_v35  ;;  %v203_v19 = vsub.s32 4294967266, %v198_v35  ;;  %v200_v25 = vshll.u32 %v191_v0, %v198_v35  ;;  %vm236_vm14 = vcmp.eq.s32.totalorder %v234_v50, 0 }
  0xd3   :  { %v713_v29 = vshrl.u32 %v343_v24, 30  ;;  %vm239_vm15 = vcmp.eq.s32.totalorder %v234_v50, 2  ;;  %vm235_vm1 = vcmp.lt.s32.totalorder %v234_v50, 2 }
  0xd4   :  { %v201_v27 = vshrl.u32 %v183_v17, %v199_v18  ;;  %v204_v28 = vadd.s32 127, %v203_v19 }
  0xd5   :  { %v345_v37 = vshll.u32 %v713_v29, 30  ;;  %v368_v35 = vsub.s32 4, %v713_v29 }
  0xd6   :  { %v202_v31 = vor.u32 %v201_v27, %v200_v25  ;;  %v205_v30 = vshll.u32 %v204_v28, 23 }
  0xd7   :  { %v346_v38 = vsub.s32 %v342_v22, %v345_v37 }
  0xd8   :  { %v206_v34 = vor.u32 4788187, %v205_v30  ;;  %v209_v41 = vcvt.s32.f32 %v202_v31  ;;  %v369_v31 = vsel %vm246_vm12, %v368_v35, %v713_v29 }
  0xd9   :  { %vm347_vm8 = vcmp.lt.s32.totalorder %v346_v38, 0  ;;  %v348_v43 = vsub.s32 0, %v346_v38 }
  0xda   :  { %v207_v39 = vand.u32 2147483647, %v206_v34 }
  0xdb   :  { %v349_v1 = vsel %vm347_vm8, %v348_v43, %v346_v38 }
  0xdc   :  { %v210_v44 = vmul.f32 %v209_v41, %v207_v39  ;;  %v350_v51 = vclz %v349_v1  ;;  %v371_v39 = vsel %vm733_vm13, 0, %v369_v31 }
  0xdd   :  { %v388_v1 = vadd.s32 3, %v371_v39 }
  0xde   :  { %v211_v46 = vxor.u32 2147483648, %v210_v44  ;;  %v427_v47 = vadd.s32 4294967294, %v350_v51 }
  0xdf   :  { %v389_v52 = vand.u32 3, %v388_v1 }
  0xe0   :  { %v212_v26 = vsel %vm91_vm9, %v211_v46, %v210_v44  ;;  %vm428_vm11 = vcmp.lt.s32.totalorder %v427_v47, 0 }
  0xe1   :  { %v215_v42 = vsel %vm719_vm10, %v573_v11, %v212_v26  ;;  %v353_v32 = vsel %vm428_vm11, 0, %v427_v47  ;;  %vm391_vm3 = vcmp.eq.s32.totalorder %v389_v52, 0  ;;  %vm394_vm4 = vcmp.eq.s32.totalorder %v389_v52, 2 }
  0xe2   :  { %v217_v54 = vmul.f32 %v215_v42, %v215_v42  ;;  %v354_v56 = vsub.s32 32, %v353_v32  ;;  %v358_v55 = vsub.s32 4294967266, %v353_v32  ;;  %v355_v58 = vshll.u32 %v346_v38, %v353_v32 }
  0xe3   :  { %vm390_vm5 = vcmp.lt.s32.totalorder %v389_v52, 2 }
  0xe4   :  { %v225_v49 = vmul.f32 -0.00019511016, %v217_v54  ;;  %v218_v57 = vmul.f32 -0.001358992, %v217_v54  ;;  %v356_v59 = vshrl.u32 %v338_v36, %v354_v56  ;;  %v359_v60 = vadd.s32 127, %v358_v55 }
  0xe6   :  { %v226_v61 = vadd.f32 0.008332121, %v225_v49  ;;  %v219_v62 = vadd.f32 0.041655596, %v218_v57  ;;  %v357_v63 = vor.u32 %v356_v59, %v355_v58  ;;  %v360_v0 = vshll.u32 %v359_v60, 23 }
  0xe8   :  { %v227_v2 = vmul.f32 %v226_v61, %v217_v54  ;;  %v220_v3 = vmul.f32 %v219_v62, %v217_v54  ;;  %v361_v4 = vor.u32 4788187, %v360_v0  ;;  %v364_v5 = vcvt.s32.f32 %v357_v63 }
  0xea   :  { %v228_v33 = vadd.f32 -0.16666654, %v227_v2  ;;  %v221_v48 = vadd.f32 -0.4999988, %v220_v3  ;;  %v362_v20 = vand.u32 2147483647, %v361_v4 }
  0xec   :  { %v229_v7 = vmul.f32 %v228_v33, %v217_v54  ;;  %v222_v40 = vmul.f32 %v221_v48, %v217_v54  ;;  %v365_v23 = vmul.f32 %v364_v5, %v362_v20 }
  0xee   :  { %v230_v8 = vadd.f32 1.0, %v229_v7  ;;  %v223_v9 = vadd.f32 1.0, %v222_v40  ;;  %v366_v10 = vxor.u32 2147483648, %v365_v23 }
  0xf0   :  { %v231_v14 = vmul.f32 %v230_v8, %v215_v42  ;;  %v240_v16 = vxor.u32 2147483648, %v223_v9  ;;  %v367_v22 = vsel %vm246_vm12, %v366_v10, %v365_v23 }
  0xf1   :  { %v370_v17 = vsel %vm733_vm13, %v575_v12, %v367_v22 }
  0xf2   :  { %v237_v18 = vxor.u32 2147483648, %v231_v14  ;;  %v372_v19 = vmul.f32 %v370_v17, %v370_v17  ;;  %v241_v25 = vsel %vm239_vm15, %v240_v16, %v231_v14 }
  0xf4   :  { %v238_v24 = vsel %vm236_vm14, %v223_v9, %v237_v18  ;;  %v380_v15 = vmul.f32 -0.00019511016, %v372_v19  ;;  %v373_v28 = vmul.f32 -0.001358992, %v372_v19 }
  0xf5   :  { %v242_v27 = vsel %vm235_vm1, %v238_v24, %v241_v25 }
  0xf6   :  { %v243_v30 = vsel %vm232_vm2, nan, %v242_v27  ;;  %v381_v37 = vadd.f32 0.008332121, %v380_v15  ;;  %v374_v34 = vadd.f32 0.041655596, %v373_v28 }
  0xf7   :  { %399 = vst.msk [vmem:[#allocation7] sm:$0xff] %vm57_vm0, %v243_v30 }
  0xf8   :  { %v382_v38 = vmul.f32 %v381_v37, %v372_v19  ;;  %v375_v41 = vmul.f32 %v374_v34, %v372_v19 }
  0xfa   :  { %v383_v43 = vadd.f32 -0.16666654, %v382_v38  ;;  %v376_v44 = vadd.f32 -0.4999988, %v375_v41 }
  0xfc   :  { %v384_v11 = vmul.f32 %v383_v43, %v372_v19  ;;  %v377_v51 = vmul.f32 %v376_v44, %v372_v19 }
  0xfe   :  { %v385_v46 = vadd.f32 1.0, %v384_v11  ;;  %v378_v47 = vadd.f32 1.0, %v377_v51 }
 0x100   :  { %v386_v26 = vmul.f32 %v385_v46, %v370_v17  ;;  %v395_v29 = vxor.u32 2147483648, %v378_v47 }
 0x102   :  { %v392_v53 = vxor.u32 2147483648, %v386_v26  ;;  %v396_v54 = vsel %vm394_vm4, %v395_v29, %v386_v26 }
 0x104   :  { %v393_v42 = vsel %vm391_vm3, %v378_v47, %v392_v53 }
 0x105   :  { %v397_v32 = vsel %vm390_vm5, %v393_v42, %v396_v54 }
 0x106   :  { %v398_v36 = vsel %vm387_vm6, nan, %v397_v32 }
 0x107   :  { %400 = vst.msk [vmem:[#allocation7 + $0x8] sm:$0xff] %vm57_vm0, %v398_v36 }
 0x108   :  { %413 = dma.vmem_to_hbm [thread:$0]  %s406_s24, 256, %s408_s27, [#allocation4], %s525_s20, %s525_s20, %s526_s21  }
 0x109   :  { %522 = dma.done.wait [#allocation4], 256  }
 0x10a   :  { %523 = vsyncadd [#allocation4], 4294967040 }
 0x10b   :  { %418 = vsyncpa [#allocation3], 1 }
 0x10c   :  { %419 = vsyncpa [#allocation6], 1 }
 0x10d   :  { %420 = vsyncpa [#allocation4], 1 }

</bundles_post_ra>
